<compile_context>
chip_gen: v7x
topology: tpu7x:2x2x1
jax: 0.10.0
libtpu: 0.0.40
codegen_flags: <defaults>
</compile_context>

<pallas_src>
import math
import numpy as np

import jax
import jax.numpy as jnp
from jax.experimental import pallas as pl
from jax.experimental.pallas import tpu as pltpu


def _round_up(a, b):
    return -(-a // b) * b


# ----------------------------------------------------------------------------
# Deterministic buffer construction (plain numpy, float64), mirrors
# ToS2Grid.__init__ (spherical_harmonics_s2_grid + expand matrix + normalization)
# ----------------------------------------------------------------------------
def complete_lmax_res(lmax, res_beta, res_alpha):
    if res_beta is None:
        res_beta = 2 * (lmax + 1)
    if res_alpha is None:
        if lmax is not None:
            if res_beta is not None:
                res_alpha = max(2 * lmax + 1, res_beta - 1)
            else:
                res_alpha = 2 * lmax + 1
        elif res_beta is not None:
            res_alpha = res_beta - 1
    if lmax is None:
        lmax = min(res_beta // 2 - 1, res_alpha // 2)
    assert res_beta % 2 == 0
    assert lmax + 1 <= res_beta // 2
    return lmax, res_beta, res_alpha


def _s2_grid(res_beta, res_alpha):
    i = np.arange(res_beta, dtype=np.float64)
    betas = (i + 0.5) / res_beta * math.pi
    i = np.arange(res_alpha, dtype=np.float64)
    alphas = i / res_alpha * 2.0 * math.pi
    return betas, alphas


def _sh_alpha(lmax, alphas):
    """sha [a, 2*lmax+1] = [sqrt2*sin(l a) .. sqrt2*sin(a), 1, sqrt2*cos(a) .. sqrt2*cos(l a)]"""
    A = alphas.shape[0]
    a = alphas[:, None]
    m_cos = np.arange(1, lmax + 1, dtype=np.float64)[None, :]
    m_sin = np.arange(lmax, 0, -1, dtype=np.float64)[None, :]
    return np.concatenate(
        [math.sqrt(2.0) * np.sin(m_sin * a),
         np.ones((A, 1), dtype=np.float64),
         math.sqrt(2.0) * np.cos(m_cos * a)], axis=1)


def _legendre_flat(lmax, z, y):
    """e3nn-style z-part of the real SH: [b, (lmax+1)**2], flat over l, m=-l..l
    (value depends only on |m|).  Normalized associated Legendre (no Condon-Shortley)
    including e3nn's (-1)**l phase convention."""
    N = {(0, 0): np.full_like(z, math.sqrt(1.0 / (4.0 * math.pi)))}
    for m in range(1, lmax + 1):
        N[(m, m)] = math.sqrt((2.0 * m + 1.0) / (2.0 * m)) * y * N[(m - 1, m - 1)]
    for m in range(0, lmax):
        N[(m + 1, m)] = math.sqrt(2.0 * m + 3.0) * z * N[(m, m)]
    for m in range(0, lmax + 1):
        for l in range(m + 2, lmax + 1):
            a = math.sqrt((4.0 * l * l - 1.0) / (l * l - m * m))
            b = math.sqrt(((l - 1.0) ** 2 - m * m) / (4.0 * (l - 1.0) ** 2 - 1.0))
            N[(l, m)] = a * (z * N[(l - 1, m)] - b * N[(l - 2, m)])
    out = np.zeros((z.shape[0], (lmax + 1) ** 2), dtype=np.float64)
    i = 0
    for l in range(lmax + 1):
        for m in range(-l, l + 1):
            out[:, i] = ((-1.0) ** l) * N[(l, abs(m))]
            i += 1
    return out


def make_to_s2grid_buffers(lmax=None, res=None, normalization="component",
                           dtype=jnp.bfloat16):
    """Builds the fused constant W[I, BA_pad] = einsum('am,mbi->i(ba)', sha, shb),
    zero-padded in its last dim to a multiple of 128 (lane-dense output stores),
    entirely on the host (float64), plus the un-fused buffers for reference checks.

    dtype defaults to bf16: halves x/W HBM reads and avoids f32 MXU emulation on
    v5e; accumulation inside the kernel is always f32.
    """
    if isinstance(res, int) or res is None:
        lmax, res_beta, res_alpha = complete_lmax_res(lmax, res, None)
    else:
        lmax, res_beta, res_alpha = complete_lmax_res(lmax, *res)

    betas, alphas = _s2_grid(res_beta, res_alpha)
    sha = _sh_alpha(lmax, alphas)                                          # [a, m]
    shb = _legendre_flat(lmax, np.cos(betas), np.abs(np.sin(betas)))       # [b, i]

    if normalization == "component":
        n = (math.sqrt(4 * math.pi)
             * np.array([1.0 / math.sqrt(2 * l + 1) for l in range(lmax + 1)])
             / math.sqrt(lmax + 1))
    elif normalization == "norm":
        n = math.sqrt(4 * math.pi) * np.ones(lmax + 1) / math.sqrt(lmax + 1)
    elif normalization == "none":
        n = np.ones(lmax + 1)
    else:
        n = np.asarray(normalization, dtype=np.float64)

    # shb_c = einsum('lmj,bj,lmi,l->mbi', expand, shb, expand, n) computed directly:
    # nonzero only where the m of flat index i equals the row m.
    Mdim = 2 * lmax + 1
    I = (lmax + 1) ** 2
    shb_c = np.zeros((Mdim, res_beta, I), dtype=np.float64)
    i = 0
    for l in range(lmax + 1):
        for msig in range(-l, l + 1):
            shb_c[lmax + msig, :, i] = n[l] * shb[:, i]
            i += 1

    # Fused single-matmul weight: out[z, b*A + a] = sum_i x[z, i] * W[i, b*A + a]
    # W[i, b, a] = sum_m sha[a, m] * shb_c[m, b, i]
    BA = res_beta * res_alpha
    W = np.einsum('am,mbi->iba', sha, shb_c).reshape(I, BA)
    # Zero-pad columns up to a multiple of 128 -> unmasked lane-dense stores in
    # the kernel; padding columns produce zeros and are sliced off in the wrapper.
    ba_pad = _round_up(BA, 128)
    if ba_pad != BA:
        W = np.concatenate([W, np.zeros((I, ba_pad - BA), dtype=np.float64)], axis=1)

    return (jnp.asarray(W, dtype=dtype),              # [I, BA_pad] (fused, kernel)
            jnp.asarray(shb_c, dtype=jnp.float32),    # [M, B, I]   (reference only)
            jnp.asarray(sha, dtype=jnp.float32),      # [A, M]      (reference only)
            lmax, res_beta, res_alpha)


# ----------------------------------------------------------------------------
# Pallas kernel: single fused matmul  x_tile[TZ, I] @ W[I, TN] -> [TZ, TN]
# ----------------------------------------------------------------------------
MAX_TZ = 4096          # amortize the ~0.35 us per-grid-step pipeline overhead
_VMEM_BUDGET = 26 * 1024 * 1024   # bytes for pipelined blocks; fits every generation
_VMEM_LIMIT = 32 * 1024 * 1024    # scoped-VMEM limit passed to the compiler


def _to_s2grid_kernel(x_ref, w_ref, o_ref):
    # x_ref : [TZ, I]   batch tile (input dtype; cast to W's dtype on the VPU --
    #                    the kernel is HBM-bound so the cast is free and avoids
    #                    a separate XLA astype round trip through HBM)
    # w_ref : [I, TN]   fused sha*shb*normalization constant slab (lane-dense N)
    # o_ref : [TZ, TN]  output tile in final (z, b*A + a) layout, lane-dense stores
    x = x_ref[...].astype(w_ref.dtype)
    o_ref[...] = jnp.dot(x, w_ref[...],
                         preferred_element_type=jnp.float32).astype(o_ref.dtype)


def _choose_tiles(z_rows, I, ba_pad, x_bytes, w_bytes, out_bytes, max_tz):
    """Pick (tz, tn) so the double-buffered VMEM blocks stay under budget.

    Accounts for the (8,128)-tile layout rounding of the lane-sparse x tile and
    the sublane rounding of W.  N-tiling caps VMEM independent of resolution
    (needed for large (lmax, res) on v7x's 64 MiB per-TC VMEM)."""
    gran = 8                          # sublane granularity of the batch tile
    i_lanes = _round_up(I, 128)       # x tile minor dim padded to 128 lanes in VMEM
    i_rows = _round_up(I, 8)          # W tile sublane rounding

    def need(tn, tz):
        # TODO(synk): W with index_map (0, n) only truly needs a single buffer
        # (pl.Buffered(1)) when nn == 1; counted double-buffered here to stay
        # conservative and avoid relying on pipeline_mode support.
        return (2 * i_rows * tn * w_bytes       # W block
                + 2 * tz * i_lanes * x_bytes    # x block
                + 2 * tz * tn * out_bytes)      # out block

    z_cap = _round_up(z_rows, gran)

    # N tile: largest multiple of 128 dividing ba_pad such that a decent batch
    # tile (>=512 rows when the batch is that big) still fits the budget.
    lanes = ba_pad // 128
    d = lanes
    while d > 1 and need(d * 128, min(512, z_cap)) > _VMEM_BUDGET:
        d = max(k for k in range(1, d) if lanes % k == 0)
    tn = d * 128

    # Batch tile: largest power-of-two multiple of 8 within budget / max_tz / Z.
    tz = gran
    while tz * 2 <= max_tz and tz * 2 <= z_cap and need(tn, tz * 2) <= _VMEM_BUDGET:
        tz *= 2

    nz = -(-z_rows // tz)
    nn = ba_pad // tn
    # Guarantee >=2 grid steps when possible so v7x megacore sharding engages.
    if nz * nn < 2 and z_rows > gran:
        tz = max(gran, _round_up(-(-z_rows // 2), gran))
        nz = -(-z_rows // tz)

    vmem_need = need(tn, tz)
    assert vmem_need <= _VMEM_LIMIT, (
        f"tile selection exceeded VMEM budget: {vmem_need} bytes")
    return tz, tn, nz, nn, vmem_need


def to_s2grid_forward(x, w, res_beta, res_alpha, out_dtype=None, max_tz=MAX_TZ):
    """x: [..., I] -> [..., res_beta, res_alpha]  (ToS2Grid.forward).

    w: fused, column-padded [I, BA_pad] constant from make_to_s2grid_buffers; its
    dtype sets the MXU compute dtype (f32 or bf16), accumulation is always f32.
    out_dtype: dtype of the kernel output (defaults to x.dtype); bf16 halves the
    dominant output writeback traffic."""
    size = x.shape[:-1]
    I = x.shape[-1]
    lmax = round(I ** 0.5) - 1
    assert (lmax + 1) ** 2 == I
    BA = res_beta * res_alpha
    ba_pad = w.shape[1]
    assert w.shape[0] == I and ba_pad >= BA and ba_pad % 128 == 0

    if out_dtype is None:
        out_dtype = x.dtype

    Z = 1
    for s in size:
        Z *= int(s)
    xf = x.reshape(Z, I)

    # Ragged grid (pl.cdiv) instead of padding: no extra HBM round trip for a
    # jnp.pad of x and no out[:Z] re-copy of the large output.  Only for batches
    # smaller than one sublane group (Z < 8) do we pad -- negligible.
    gran = 8
    z_rows = Z
    if Z < gran:
        xf = jnp.pad(xf, ((0, gran - Z), (0, 0)))
        z_rows = gran

    x_bytes = jnp.dtype(x.dtype).itemsize
    w_bytes = jnp.dtype(w.dtype).itemsize
    out_bytes = jnp.dtype(out_dtype).itemsize
    tz, tn, nz, nn, _ = _choose_tiles(z_rows, I, ba_pad, x_bytes, w_bytes,
                                      out_bytes, max_tz)

    cost = pl.CostEstimate(
        flops=2 * z_rows * I * ba_pad,
        transcendentals=0,
        bytes_accessed=(nn * z_rows * I * x_bytes        # x (re-read per N tile)
                        + I * ba_pad * w_bytes           # W
                        + z_rows * ba_pad * out_bytes))  # output

    # Grid: N outer (W slab stays resident across the inner batch loop), Z inner.
    # Both axes independent ("parallel") -> megacore-shardable on v7x.
    out = pl.pallas_call(
        _to_s2grid_kernel,
        out_shape=jax.ShapeDtypeStruct((z_rows, ba_pad), out_dtype),
        grid_spec=pltpu.PrefetchScalarGridSpec(
            num_scalar_prefetch=0,
            grid=(nn, nz),
            in_specs=[
                pl.BlockSpec((tz, I), lambda n, z: (z, 0)),   # batch tile
                pl.BlockSpec((I, tn), lambda n, z: (0, n)),   # W slab
            ],
            out_specs=pl.BlockSpec((tz, tn), lambda n, z: (z, n)),
        ),
        compiler_params=pltpu.CompilerParams(
            dimension_semantics=("parallel", "parallel"),
            vmem_limit_bytes=_VMEM_LIMIT),
        cost_estimate=cost,
    )(xf, w)

    if z_rows != Z:
        out = out[:Z]            # only hit for Z < 8 (tiny)
    if ba_pad != BA:
        out = out[:, :BA]        # drop zero-padded lane columns
    return out.reshape(*size, res_beta, res_alpha)


# ----------------------------------------------------------------------------
if __name__ == "__main__":
    key = jax.random.PRNGKey(0)

    # --- Case 1: lane-aligned grid (16x16), f32 weights + f32 output, tight check.
    lmax = 5
    W32, shb_c, sha, lmax, res_beta, res_alpha = make_to_s2grid_buffers(
        lmax=lmax, res=(16, 16), normalization="component", dtype=jnp.float32)
    x = jax.random.normal(key, (2, 4, (lmax + 1) ** 2), dtype=jnp.float32)

    y = jax.block_until_ready(
        to_s2grid_forward(x, W32, res_beta, res_alpha, out_dtype=jnp.float32))
    assert y.shape == (2, 4, res_beta, res_alpha), y.shape

    # plain-JAX reference of the same forward (the original two einsums)
    xf = x.reshape(-1, (lmax + 1) ** 2)
    ref = jnp.einsum('mbi,zi->zbm', shb_c, xf)
    ref = jnp.einsum('am,zbm->zba', sha, ref).reshape(2, 4, res_beta, res_alpha)
    assert jnp.allclose(y, ref, rtol=1e-4, atol=1e-4), float(jnp.max(jnp.abs(y - ref)))

    # --- Case 2: default fast path -- bf16 W (builder default) + bf16 output.
    # Halves both read and (dominant) write HBM traffic; f32 accumulation keeps
    # error to input rounding only -> loose tolerance vs the f32 reference.
    Wb = make_to_s2grid_buffers(lmax=5, res=(16, 16), normalization="component")[0]
    yb = jax.block_until_ready(
        to_s2grid_forward(x, Wb, res_beta, res_alpha, out_dtype=jnp.bfloat16))
    assert yb.dtype == jnp.bfloat16
    assert jnp.allclose(yb.astype(jnp.float32), ref, rtol=5e-2, atol=5e-2), \
        float(jnp.max(jnp.abs(yb.astype(jnp.float32) - ref)))

    # --- Case 3: default res (odd res_alpha -> irfft path in the reference, fused
    # here into W exactly), non-128-aligned B*A (exercises zero-padded columns +
    # wrapper slice) and a ragged batch Z=10 (exercises the pl.cdiv ragged grid
    # and the >=2-step megacore split).
    W2, shb2, sha2, lm2, rb2, ra2 = make_to_s2grid_buffers(
        lmax=3, res=None, normalization="component", dtype=jnp.float32)
    x2 = jax.random.normal(jax.random.PRNGKey(1), (5, 2, (lm2 + 1) ** 2),
                           dtype=jnp.float32)
    y2 = jax.block_until_ready(
        to_s2grid_forward(x2, W2, rb2, ra2, out_dtype=jnp.float32))
    assert y2.shape == (5, 2, rb2, ra2), y2.shape
    xf2 = x2.reshape(-1, (lm2 + 1) ** 2)
    ref2 = jnp.einsum('mbi,zi->zbm', shb2, xf2)
    ref2 = jnp.einsum('am,zbm->zba', sha2, ref2).reshape(5, 2, rb2, ra2)
    assert jnp.allclose(y2, ref2, rtol=1e-4, atol=1e-4), \
        float(jnp.max(jnp.abs(y2 - ref2)))

    print("KERNEL_OK")
</pallas_src>

<mosaic_0001>
module attributes {stable_mosaic.version = 11 : i64} {
  func.func @_to_s2grid_kernel(%arg0: i32, %arg1: i32, %arg2: memref<8x36xf32, #tpu.memory_space<vmem>>, %arg3: memref<36x256xf32, #tpu.memory_space<vmem>>, %arg4: memref<8x256xf32, #tpu.memory_space<vmem>>) attributes {dimension_semantics = [#tpu.dimension_semantics<parallel>, #tpu.dimension_semantics<parallel>], iteration_bounds = array<i64: 1, 1>, scalar_prefetch = 0 : i64, scratch_operands = 0 : i64, tpu.core_type = #tpu.core_type<tc>, window_params = [{transform_indices = @transform_0, window_bounds = array<i64: 8, 36>}, {transform_indices = @transform_1, window_bounds = array<i64: 36, 256>}, {transform_indices = @transform_2, window_bounds = array<i64: 8, 256>}]} {
    %c0 = arith.constant 0 : index
    %c0_0 = arith.constant 0 : index
    %0 = vector.load %arg2[%c0, %c0_0] : memref<8x36xf32, #tpu.memory_space<vmem>>, vector<8x36xf32>
    %c0_1 = arith.constant 0 : index
    %c0_2 = arith.constant 0 : index
    %1 = vector.load %arg3[%c0_1, %c0_2] : memref<36x256xf32, #tpu.memory_space<vmem>>, vector<36x256xf32>
    %cst = arith.constant dense<0.000000e+00> : vector<8x256xf32>
    %2 = tpu.matmul %0, %1, %cst {dimension_numbers = #tpu.dot_dimension_numbers<[1], [0], [0], [1], [0, 0, 1, 1], [], []>} : vector<8x36xf32>, vector<36x256xf32>, vector<8x256xf32> -> vector<8x256xf32>
    %c0_3 = arith.constant 0 : index
    %c0_4 = arith.constant 0 : index
    %3 = vector.load %arg4[%c0_3, %c0_4] : memref<8x256xf32, #tpu.memory_space<vmem>>, vector<8x256xf32>
    tpu.vector_store %arg4[%c0_3, %c0_4], %2 {strides = array<i32>} : memref<8x256xf32, #tpu.memory_space<vmem>>, vector<8x256xf32>,
    return
  }
  func.func @transform_0(%arg0: i32, %arg1: i32) -> (i32, i32) {
    %c0_i32 = arith.constant 0 : i32
    %c0_i32_0 = arith.constant 0 : i32
    return %arg1, %c0_i32 : i32, i32
  }
  func.func @transform_1(%arg0: i32, %arg1: i32) -> (i32, i32) {
    %c0_i32 = arith.constant 0 : i32
    %c0_i32_0 = arith.constant 0 : i32
    return %c0_i32, %arg0 : i32, i32
  }
  func.func @transform_2(%arg0: i32, %arg1: i32) -> (i32, i32) {
    %c0_i32 = arith.constant 0 : i32
    return %arg1, %arg0 : i32, i32
  }
}

</mosaic_0001>

<bundles_post_ra>
// kernel: tpu_custom_call.1
= control target key start
LH: loop header
LB: loop body
LE: loop exit
PB: predicated region body
PF: predicated region fallthrough
CT: control target
= control target key end

     0   :  { %7 = vsyncpa [#allocation3], 0  ;;  %s302_s0 = inlined_call_operand.hbm [shape: f32[8,36], index: 0, kind: input, shape index: {}]   ;;  %s303_s1 = inlined_call_operand.hbm [shape: f32[36,256], index: 1, kind: input, shape index: {}]   ;;  %s304_s2 = inlined_call_operand.hbm [shape: f32[8,256], index: 2, kind: output, shape index: {}]  }
   0x1   :  { %8 = vsyncpa [#allocation6], 0 }
   0x2   :  { %9 = vsyncpa [#allocation4], 0  ;;  %s238_s9 = smov [#allocation2]   ;;  %s239_s11 = smov [#allocation5]  }
   0x3   :  { %s16_s10 = sshll.u32 %s238_s9, 4  ;;  %s25_s12 = sshll.u32 %s239_s11, 4  ;;  %s17_s10 = int_to_ptr.vmem [resolvable:$true] %s16_s10  ;;  %s259_s12 = int_to_ptr.vmem [resolvable:$true] %s25_s12 }
   0x4   :  { %s166_s15 = scalar_lea.hbm %s302_s0, 128 }
   0x5   :  { %p167_p0 = scmp.ne.s32.totalorder %s302_s0, %s166_s15  ;;  %p170_p1 = scmp.lt.u32.totalorder %s166_s15, %s302_s0 }
   0x7   :  { %p172_p2 = pnand %p170_p1, %p167_p0 }
   0x9   :  { %175 = shalt.err (!%p172_p2)
}
   0xa   :  { %s176_s20 = scalar_lea.vmem %s17_s10, 128  ;;  %p181_p4 = scmp.lt.s32.totalorder %s17_s10, %s17_s10 }
   0xb   :  { %p177_p3 = scmp.ne.s32.totalorder %s17_s10, %s176_s20  ;;  %p182_p5 = scmp.lt.s32.totalorder %s176_s20, %s176_s20 }
   0xd   :  { %p183_p6 = por %p182_p5, %p181_p4 }
   0xf   :  { %p184_p7 = pnand %p183_p6, %p177_p3 }
  0x11   :  { %187 = shalt.err (!%p184_p7)
}
  0x12   :  { %19 = dma.hbm_to_vmem [thread:$0]  %s302_s0, 128, %s17_s10, [#allocation3]  }
  0x13   :  { %s188_s25 = scalar_lea.hbm %s303_s1, 1280 }
  0x14   :  { %p189_p8 = scmp.ne.s32.totalorder %s303_s1, %s188_s25  ;;  %p192_p9 = scmp.lt.u32.totalorder %s188_s25, %s303_s1 }
  0x16   :  { %p194_p10 = pnand %p192_p9, %p189_p8 }
  0x18   :  { %197 = shalt.err (!%p194_p10)
}
  0x19   :  { %s198_s30 = scalar_lea.vmem %s259_s12, 1280  ;;  %p203_p12 = scmp.lt.s32.totalorder %s259_s12, %s259_s12 }
  0x1a   :  { %p199_p11 = scmp.ne.s32.totalorder %s259_s12, %s198_s30  ;;  %p204_p13 = scmp.lt.s32.totalorder %s198_s30, %s198_s30 }
  0x1c   :  { %p205_p0 = por %p204_p13, %p203_p12 }
  0x1e   :  { %p206_p1 = pnand %p205_p0, %p199_p11 }
  0x20   :  { %209 = shalt.err (!%p206_p1)
}
  0x21   :  { %s240_s0 = smov 256   ;;  %s241_s3 = smov 16  }
  0x22   :  { %31 = dma.hbm_to_vmem [thread:$0]  %s303_s1, 1280, %s259_s12, [#allocation6], %s240_s0, %s240_s0, %s241_s3  }
  0x23   :  { %232 = dma.done.wait [#allocation3], 128  }
  0x24   :  { %233 = vsyncadd [#allocation3], 4294967168 }
  0x25   :  { %234 = dma.done.wait [#allocation6], 1280  }
  0x26   :  { %235 = vsyncadd [#allocation6], 4294966016  ;;  %v242_v0 = vmov 0.0   ;;  %v40_v1 = vld [vmem:[#allocation5 + $0x8] sm:$0xff]  ;;  %v42_v2 = vld [vmem:[#allocation5 + $0x18] sm:$0xff]  ;;  %vm53_vm0 = vcmask 1043456  }
  0x27   :  { %124 = vmatprep.mubr.f32.mxu0 %v242_v0  ;;  %v39_v3 = vld [vmem:[#allocation5] sm:$0xff]  ;;  %v152_v4 = vpack.c.bf16 %v42_v2, %v40_v1  ;;  %v41_v5 = vld [vmem:[#allocation5 + $0x10] sm:$0xff]  ;;  %v44_v6 = vld [vmem:[#allocation5 + $0x28] sm:$0xff]  ;;  %vm49_vm1 = vcmask 293888   ;;  %s243_s1 = smov [#allocation7]  }
  0x28   :  { %v46_v7 = vld [vmem:[#allocation5 + $0x38] sm:$0xff]  ;;  %v154_v8 = vpack.c.bf16 %v41_v5, %v39_v3  ;;  %v43_v10 = vld [vmem:[#allocation5 + $0x20] sm:$0xff]  ;;  %v45_v11 = vld [vmem:[#allocation5 + $0x30] sm:$0xff]  ;;  %s139_s6 = sshll.u32 %s243_s1, 4  ;;  %s140_s6 = int_to_ptr.vmem [resolvable:$true] %s139_s6 }
  0x29   :  { %v156_v9 = vpack.c.bf16 %v46_v7, %v44_v6  ;;  %153 = vmatprep.subr.bf16.mxu0 %v152_v4  ;;  %v158_v12 = vpack.c.bf16 %v45_v11, %v43_v10  ;;  %v48_v13 = vld [vmem:[#allocation5 + $0x48] sm:$0xf]  ;;  %v47_v14 = vld [vmem:[#allocation5 + $0x40] sm:$0xf]  ;;  %v38_v15 = vld [vmem:[#allocation2] sm:$0xff]  ;;  %s210_s7 = scalar_lea.vmem %s140_s6, 256  ;;  %p215_p3 = scmp.lt.s32.totalorder %s140_s6, %s140_s6 }
  0x2a   :  { %155 = vmatpush1.bf16.msra.mxu0 %v154_v8  ;;  %p211_p2 = scmp.ne.s32.totalorder %s140_s6, %s210_s7  ;;  %p216_p4 = scmp.lt.s32.totalorder %s210_s7, %s210_s7 }
  0x2b   :  { %157 = vmatprep.subr.bf16.mxu0 %v156_v9 }
  0x2c   :  { %p217_p5 = por %p216_p4, %p215_p3 }
  0x2e   :  { %159 = vmatpush1.bf16.msra.mxu0 %v158_v12  ;;  %p218_p6 = pnand %p217_p5, %p211_p2 }
  0x2f   :  { %149 = vmatprep.subr.msk.mxu0 %vm53_vm0, %v48_v13 }
  0x32   :  { %150 = vmatpush1.msk.msra.mxu0 %vm53_vm0, %v47_v14 }
  0x33   :  { %151 = vmatmul.mubr.msk.f32.vlgmr.msra.gmra.mrb[0].mxu0 %vm49_vm1, %v38_v15 }
 0x106   :  { %v126_v16 = vpop.f32.mrb[0].mxu0 }
 0x107   :  { %131 = vst [vmem:[#allocation7] sm:$0xff] %v126_v16  ;;  %v128_v17 = vpop.f32.mrb[1].mxu0 }
 0x108   :  { %132 = vst [vmem:[#allocation7 + $0x8] sm:$0xff] %v128_v17 }
 0x109   :  { %221 = shalt.err (!%p218_p6)
}
 0x10a   :  { %s222_s10 = scalar_lea.hbm %s304_s2, 256 }
 0x10b   :  { %p223_p7 = scmp.ne.s32.totalorder %s304_s2, %s222_s10  ;;  %p226_p8 = scmp.lt.u32.totalorder %s222_s10, %s304_s2 }
 0x10d   :  { %p228_p9 = pnand %p226_p8, %p223_p7 }
 0x10f   :  { %231 = shalt.err (!%p228_p9)
}
 0x110   :  { %142 = dma.vmem_to_hbm [thread:$0]  %s140_s6, 256, %s304_s2, [#allocation4]  }
 0x111   :  { %236 = dma.done.wait [#allocation4], 256  }
 0x112   :  { %237 = vsyncadd [#allocation4], 4294967040 }
 0x113   :  { %146 = vsyncpa [#allocation3], 1 }
 0x114   :  { %147 = vsyncpa [#allocation6], 1 }
 0x115   :  { %148 = vsyncpa [#allocation4], 1 }

</bundles_post_ra>
